<compile_context>
chip_gen: v5e
topology: v5e:2x2
jax: 0.10.0
libtpu: 0.0.40
codegen_flags: <defaults>
</compile_context>

<pallas_src>
import functools

import jax
import jax.numpy as jnp
from jax.experimental import pallas as pl
from jax.experimental.pallas import tpu as pltpu


def _round_up(v: int, m: int) -> int:
    return (v + m - 1) // m * m


def _ff_fused_kernel(*refs, use_relu: bool, use_bias: bool):
    """Fused per-expert FeedForward.

    refs (bias case):    x_ref (Bp, Dp), w_ref (Dp, Dp), b_ref (1, Dp),
                         o_ref (Bp, Dp), act_ref VMEM (Bp, Dp) f32
    Grid = (E, L): expert axis parallel, layer axis arbitrary (sequential).
    """
    if use_bias:
        x_ref, w_ref, b_ref, o_ref, act_ref = refs
    else:
        x_ref, w_ref, o_ref, act_ref = refs
        b_ref = None

    layer = pl.program_id(1)
    last = pl.num_programs(1) - 1

    # Load the expert's input into the resident activation scratch once.
    @pl.when(layer == 0)
    def _():
        act_ref[...] = x_ref[...].astype(act_ref.dtype)

    # bf16 x bf16 -> f32 accumulation on the MXU.
    h = act_ref[...].astype(w_ref.dtype)
    y = jnp.dot(h, w_ref[...], preferred_element_type=jnp.float32)
    if use_bias:
        y = y + b_ref[...].astype(jnp.float32)  # broadcast (1, Dp) over batch

    # Intermediate layers: (optional ReLU) and keep activation in VMEM.
    @pl.when(layer < last)
    def _():
        z = jnp.maximum(y, 0.0) if use_relu else y
        act_ref[...] = z.astype(act_ref.dtype)

    # Last layer: single lane-dense store, cast once to the output dtype.
    @pl.when(layer == last)
    def _():
        o_ref[...] = y.astype(o_ref.dtype)


def moe_feedforward(x, w_stack, b_stack, *, out_features: int, use_relu: bool):
    """Fused MoE feedforward.

    x:       (E, B, Din)
    w_stack: (E, L, Dp, Dp)   zero-padded, compute dtype (bf16)
    b_stack: (E, L, 1, Dp)    zero-padded f32, or None when bias=False
    returns  (E, B, out_features) in x.dtype
    """
    E, B, Din = x.shape
    _, L, Dp, _ = w_stack.shape
    Bp = _round_up(B, 8)
    compute_dtype = w_stack.dtype
    use_bias = b_stack is not None

    # Pad input to (Bp, Dp): lane-dense, zero padding keeps math exact.
    x_p = jnp.zeros((E, Bp, Dp), compute_dtype)
    x_p = x_p.at[:, :B, :Din].set(x.astype(compute_dtype))

    in_specs = [
        pl.BlockSpec((None, Bp, Dp), lambda e, l: (e, 0, 0)),
        pl.BlockSpec((None, None, Dp, Dp), lambda e, l: (e, l, 0, 0)),
    ]
    args = [x_p, w_stack]
    if use_bias:
        in_specs.append(pl.BlockSpec((None, None, 1, Dp), lambda e, l: (e, l, 0, 0)))
        args.append(b_stack)

    flops = 2 * E * L * Bp * Dp * Dp
    bytes_accessed = (
        x_p.size * x_p.dtype.itemsize
        + w_stack.size * w_stack.dtype.itemsize
        + (b_stack.size * b_stack.dtype.itemsize if use_bias else 0)
        + E * Bp * Dp * jnp.dtype(x.dtype).itemsize
    )

    kernel = functools.partial(_ff_fused_kernel, use_relu=use_relu, use_bias=use_bias)

    out = pl.pallas_call(
        kernel,
        out_shape=jax.ShapeDtypeStruct((E, Bp, Dp), x.dtype),
        grid_spec=pltpu.PrefetchScalarGridSpec(
            num_scalar_prefetch=0,
            grid=(E, L),
            in_specs=in_specs,
            out_specs=pl.BlockSpec((None, Bp, Dp), lambda e, l: (e, 0, 0)),
            scratch_shapes=[pltpu.VMEM((Bp, Dp), jnp.float32)],
        ),
        compiler_params=pltpu.CompilerParams(
            dimension_semantics=("parallel", "arbitrary"),
            vmem_limit_bytes=32 * 1024 * 1024,
        ),
        cost_estimate=pl.CostEstimate(
            flops=flops, transcendentals=0, bytes_accessed=bytes_accessed
        ),
    )(*args)
    return out[:, :B, :out_features]


class FeedForward:
    """JAX/Pallas port of the PyTorch MoE FeedForward module (ReLU non-linearity)."""

    def __init__(
        self,
        num_experts: int,
        in_features: int,
        out_features: int,
        num_layers: int,
        hidden_features: int,
        should_use_non_linearity: bool,
        bias: bool = True,
        seed: int = 0,
        compute_dtype=jnp.bfloat16,
    ):
        # TODO(synk): hydra non_linearity_cfg is fixed to ReLU here.
        self.should_use_non_linearity = should_use_non_linearity
        self.in_features = in_features
        self.out_features = out_features
        self.compute_dtype = compute_dtype

        key = jax.random.PRNGKey(seed)
        self.weights = []
        self.biases = [] if bias else None

        dims = []
        cur_in = in_features
        for _ in range(num_layers - 1):
            dims.append((cur_in, hidden_features))
            cur_in = hidden_features
        dims.append((cur_in, out_features))

        for (din, dout) in dims:
            key, kw, kb = jax.random.split(key, 3)
            bound = 1.0 / float(din) ** 0.5
            w = jax.random.uniform(
                kw, (num_experts, din, dout), jnp.float32, -bound, bound
            )
            self.weights.append(w)
            if bias:
                b = jax.random.uniform(
                    kb, (num_experts, 1, dout), jnp.float32, -bound, bound
                )
                self.biases.append(b)

        # --- Pre-pad / stack parameters once (not per call). -----------------
        L = len(dims)
        Dp = _round_up(max([in_features] + [d for (_, d) in dims]), 128)
        self._dp = Dp
        w_stack = jnp.zeros((num_experts, L, Dp, Dp), compute_dtype)
        for l, w in enumerate(self.weights):
            din, dout = w.shape[1], w.shape[2]
            w_stack = w_stack.at[:, l, :din, :dout].set(w.astype(compute_dtype))
        self._w_stack = w_stack
        if bias:
            b_stack = jnp.zeros((num_experts, L, 1, Dp), jnp.float32)
            for l, b in enumerate(self.biases):
                b_stack = b_stack.at[:, l, :, : b.shape[-1]].set(b)
            self._b_stack = b_stack
        else:
            self._b_stack = None

    def __call__(self, x):
        return moe_feedforward(
            x,
            self._w_stack,
            self._b_stack,
            out_features=self.out_features,
            use_relu=self.should_use_non_linearity,
        )


def _reference(ff: FeedForward, x):
    """Pure-JAX reference using the same bf16 weights + f32 accumulation."""
    n = len(ff.weights)
    h = x
    for i, w in enumerate(ff.weights):
        y = jnp.einsum(
            "ebi,eio->ebo",
            h.astype(ff.compute_dtype),
            w.astype(ff.compute_dtype),
            preferred_element_type=jnp.float32,
        )
        if ff.biases is not None:
            y = y + ff.biases[i]
        if ff.should_use_non_linearity and i != n - 1:
            y = jnp.maximum(y, 0.0)
        h = y.astype(x.dtype)
    return h


if __name__ == "__main__":
    num_experts = 4
    batch = 8
    in_features = 16
    hidden_features = 32
    out_features = 16
    num_layers = 3

    key = jax.random.PRNGKey(0)
    x = jax.random.normal(key, (num_experts, batch, in_features), jnp.float32)

    ff = FeedForward(
        num_experts=num_experts,
        in_features=in_features,
        out_features=out_features,
        num_layers=num_layers,
        hidden_features=hidden_features,
        should_use_non_linearity=True,  # ReLU in place of hydra non_linearity_cfg
        bias=True,
        seed=0,
    )

    out = ff(x)
    jax.block_until_ready(out)

    ref = _reference(ff, x)
    assert out.shape == (num_experts, batch, out_features)
    assert jnp.allclose(out, ref, atol=1e-3, rtol=1e-3), float(
        jnp.max(jnp.abs(out - ref))
    )

    # Also exercise the no-bias / no-nonlinearity static paths.
    ff2 = FeedForward(
        num_experts=num_experts,
        in_features=in_features,
        out_features=out_features,
        num_layers=2,
        hidden_features=hidden_features,
        should_use_non_linearity=False,
        bias=False,
        seed=1,
    )
    out2 = ff2(x)
    jax.block_until_ready(out2)
    ref2 = _reference(ff2, x)
    assert jnp.allclose(out2, ref2, atol=1e-3, rtol=1e-3)

    print("KERNEL_OK")
</pallas_src>

<mosaic_0001>
module attributes {stable_mosaic.version = 11 : i64} {
  func.func @_ff_fused_kernel(%arg0: i32, %arg1: i32, %arg2: memref<1x8x128xbf16, #tpu.memory_space<vmem>>, %arg3: memref<1x1x128x128xbf16, #tpu.memory_space<vmem>>, %arg4: memref<1x1x1x128xf32, #tpu.memory_space<vmem>>, %arg5: memref<1x8x128xf32, #tpu.memory_space<vmem>>, %arg6: memref<8x128xf32, #tpu.memory_space<vmem>>) attributes {dimension_semantics = [#tpu.dimension_semantics<parallel>, #tpu.dimension_semantics<arbitrary>], iteration_bounds = array<i64: 4, 3>, scalar_prefetch = 0 : i64, scratch_operands = 1 : i64, tpu.core_type = #tpu.core_type<tc>, window_params = [{transform_indices = @transform_0, window_bounds = array<i64: 1, 8, 128>}, {transform_indices = @transform_1, window_bounds = array<i64: 1, 1, 128, 128>}, {transform_indices = @transform_2, window_bounds = array<i64: 1, 1, 1, 128>}, {transform_indices = @transform_3, window_bounds = array<i64: 1, 8, 128>}]} {
    %c0_i32 = arith.constant 0 : i32
    %0 = arith.cmpi eq, %arg1, %c0_i32 : i32
    %1 = arith.extui %0 : i1 to i32
    %c0_i32_0 = arith.constant 0 : i32
    %2 = arith.cmpi ne, %1, %c0_i32_0 : i32
    scf.if %2 {
      %c0_13 = arith.constant 0 : index
      %c0_14 = arith.constant 0 : index
      %c0_15 = arith.constant 0 : index
      %18 = vector.load %arg2[%c0_13, %c0_14, %c0_15] : memref<1x8x128xbf16, #tpu.memory_space<vmem>>, vector<1x8x128xbf16>
      %19 = vector.shape_cast %18 : vector<1x8x128xbf16> to vector<8x128xbf16>
      %20 = arith.extf %19 : vector<8x128xbf16> to vector<8x128xf32>
      %c0_16 = arith.constant 0 : index
      %c0_17 = arith.constant 0 : index
      %21 = vector.load %arg6[%c0_16, %c0_17] : memref<8x128xf32, #tpu.memory_space<vmem>>, vector<8x128xf32>
      tpu.vector_store %arg6[%c0_16, %c0_17], %20 {strides = array<i32>} : memref<8x128xf32, #tpu.memory_space<vmem>>, vector<8x128xf32>,
    } else {
    }
    %c0 = arith.constant 0 : index
    %c0_1 = arith.constant 0 : index
    %3 = vector.load %arg6[%c0, %c0_1] : memref<8x128xf32, #tpu.memory_space<vmem>>, vector<8x128xf32>
    %4 = arith.truncf %3 : vector<8x128xf32> to vector<8x128xbf16>
    %c0_2 = arith.constant 0 : index
    %c0_3 = arith.constant 0 : index
    %c0_4 = arith.constant 0 : index
    %c0_5 = arith.constant 0 : index
    %5 = vector.load %arg3[%c0_2, %c0_3, %c0_4, %c0_5] : memref<1x1x128x128xbf16, #tpu.memory_space<vmem>>, vector<1x1x128x128xbf16>
    %6 = vector.shape_cast %5 : vector<1x1x128x128xbf16> to vector<128x128xbf16>
    %cst = arith.constant dense<0.000000e+00> : vector<8x128xf32>
    %7 = tpu.matmul %4, %6, %cst {dimension_numbers = #tpu.dot_dimension_numbers<[1], [0], [0], [1], [0, 0, 1, 1], [], []>} : vector<8x128xbf16>, vector<128x128xbf16>, vector<8x128xf32> -> vector<8x128xf32>
    %c0_6 = arith.constant 0 : index
    %c0_7 = arith.constant 0 : index
    %c0_8 = arith.constant 0 : index
    %c0_9 = arith.constant 0 : index
    %8 = vector.load %arg4[%c0_6, %c0_7, %c0_8, %c0_9] : memref<1x1x1x128xf32, #tpu.memory_space<vmem>>, vector<1x1x1x128xf32>
    %9 = vector.shape_cast %8 : vector<1x1x1x128xf32> to vector<1x128xf32>
    %10 = vector.broadcast %9 : vector<1x128xf32> to vector<8x128xf32>
    %11 = arith.addf %7, %10 : vector<8x128xf32>
    %c2_i32 = arith.constant 2 : i32
    %12 = arith.cmpi slt, %arg1, %c2_i32 : i32
    %13 = arith.extui %12 : i1 to i32
    %c0_i32_10 = arith.constant 0 : i32
    %14 = arith.cmpi ne, %13, %c0_i32_10 : i32
    scf.if %14 {
      %cst_13 = arith.constant 0.000000e+00 : f32
      %18 = vector.broadcast %cst_13 : f32 to vector<8x128xf32>
      %19 = arith.maximumf %11, %18 : vector<8x128xf32>
      %c0_14 = arith.constant 0 : index
      %c0_15 = arith.constant 0 : index
      %20 = vector.load %arg6[%c0_14, %c0_15] : memref<8x128xf32, #tpu.memory_space<vmem>>, vector<8x128xf32>
      tpu.vector_store %arg6[%c0_14, %c0_15], %19 {strides = array<i32>} : memref<8x128xf32, #tpu.memory_space<vmem>>, vector<8x128xf32>,
    } else {
    }
    %c2_i32_11 = arith.constant 2 : i32
    %15 = arith.cmpi eq, %arg1, %c2_i32_11 : i32
    %16 = arith.extui %15 : i1 to i32
    %c0_i32_12 = arith.constant 0 : i32
    %17 = arith.cmpi ne, %16, %c0_i32_12 : i32
    scf.if %17 {
      %c0_13 = arith.constant 0 : index
      %c0_14 = arith.constant 0 : index
      %c0_15 = arith.constant 0 : index
      %18 = vector.load %arg5[%c0_13, %c0_14, %c0_15] : memref<1x8x128xf32, #tpu.memory_space<vmem>>, vector<1x8x128xf32>
      %19 = vector.shape_cast %18 : vector<1x8x128xf32> to vector<8x128xf32>
      %20 = vector.shape_cast %11 : vector<8x128xf32> to vector<1x8x128xf32>
      tpu.vector_store %arg5[%c0_13, %c0_14, %c0_15], %20 {strides = array<i32>} : memref<1x8x128xf32, #tpu.memory_space<vmem>>, vector<1x8x128xf32>,
    } else {
    }
    return
  }
  func.func @transform_0(%arg0: i32, %arg1: i32) -> (i32, i32, i32) {
    %c0_i32 = arith.constant 0 : i32
    %c0_i32_0 = arith.constant 0 : i32
    %c0_i32_1 = arith.constant 0 : i32
    return %arg0, %c0_i32, %c0_i32_0 : i32, i32, i32
  }
  func.func @transform_1(%arg0: i32, %arg1: i32) -> (i32, i32, i32, i32) {
    %c0_i32 = arith.constant 0 : i32
    %c0_i32_0 = arith.constant 0 : i32
    %c0_i32_1 = arith.constant 0 : i32
    return %arg0, %arg1, %c0_i32, %c0_i32_0 : i32, i32, i32, i32
  }
  func.func @transform_2(%arg0: i32, %arg1: i32) -> (i32, i32, i32, i32) {
    %c0_i32 = arith.constant 0 : i32
    %c0_i32_0 = arith.constant 0 : i32
    %c0_i32_1 = arith.constant 0 : i32
    return %arg0, %arg1, %c0_i32, %c0_i32_0 : i32, i32, i32, i32
  }
  func.func @transform_3(%arg0: i32, %arg1: i32) -> (i32, i32, i32) {
    %c0_i32 = arith.constant 0 : i32
    %c0_i32_0 = arith.constant 0 : i32
    %c0_i32_1 = arith.constant 0 : i32
    return %arg0, %c0_i32, %c0_i32_0 : i32, i32, i32
  }
}

</mosaic_0001>

<bundles_post_ra>
// kernel: tpu_custom_call.1
= control target key start
LH: loop header
LB: loop body
LE: loop exit
PB: predicated region body
PF: predicated region fallthrough
CT: control target
= control target key end

     0   :  { %s1205_s0 = inlined_call_operand.hbm [shape: bf16[4,8,128], index: 0, kind: input, shape index: {}]   ;;  %s1206_s1 = inlined_call_operand.hbm [shape: bf16[4,3,128,128], index: 1, kind: input, shape index: {}]   ;;  %s1207_s2 = inlined_call_operand.hbm [shape: f32[4,3,1,128], index: 2, kind: input, shape index: {}]   ;;  %s1208_s3 = inlined_call_operand.hbm [shape: f32[4,8,128], index: 3, kind: output, shape index: {}]  }
   0x1   :  { %1218 = sst [smem:[#allocation22_spill]] %s1206_s1 }
   0x2   :  { %1219 = sst [smem:[#allocation23_spill]] %s1208_s3 }
   0x3   :  { %8 = vsyncpa [#allocation4], 0 }
   0x4   :  { %10 = vsyncpa [#allocation4 + $0x1], 0 }
   0x5   :  { %11 = vsyncpa [#allocation7], 0 }
   0x6   :  { %13 = vsyncpa [#allocation7 + $0x1], 0 }
   0x7   :  { %14 = vsyncpa [#allocation5], 0 }
   0x8   :  { %16 = vsyncpa [#allocation5 + $0x1], 0  ;;  %s941_s12 = smov 0   ;;  %s943_s13 = smov 0  }
   0x9   :  { %s945_s14 = smov 0   ;;  %s947_s15 = smov 0  }
   0xa   :  { %s949_s16 = smov 0   ;;  %s951_s17 = smov 0  }
   0xb   :  { %s953_s18 = smov 0   ;;  %s955_s19 = smov 0  }
   0xc   :  { %s957_s20 = smov 0   ;;  %s959_s21 = smov 0  }
   0xd   :  { %s961_s22 = smov 0  }
   0xe LB: > { %1220 = sst [smem:[#allocation13_spill]] %s889_s15  ;;  %s31_s23 = sadd.s32 1, %s909_s20  ;;  %s917_s22 = sphi %s961_s22, %s22_s22   ;;  %s913_s21 = sphi %s959_s21, %s1258_s21   ;;  %s909_s20 = sphi %s957_s20, %s1257_s20   ;;  %s905_s19 = sphi %s955_s19, %s1256_s19   ;;  %s901_s18 = sphi %s953_s18, %s1255_s18   ;;  %s897_s17 = sphi %s951_s17, %s1247_s17   ;;  %s893_s16 = sphi %s949_s16, %s1254_s16   ;;  %s889_s15 = sphi %s947_s15, %s1253_s15   ;;  %s885_s14 = sphi %s945_s14, %s1252_s14   ;;  %s881_s13 = sphi %s943_s13, %s1251_s13   ;;  %s877_s12 = sphi %s941_s12, %s1250_s12  }
   0xf   : > { %1221 = sst [smem:[#allocation14_spill]] %s897_s17  ;;  %p49_p0 = scmp.eq.s32.totalorder %s917_s22, 0 }
  0x10   : > { %1222 = sst [smem:[#allocation15_spill]] %s905_s19  ;;  %p998_p1 = scmp.ge.s32.totalorder %s31_s23, 3 }
  0x11   : > { %p76_p2 = scmp.ne.s32.totalorder %s885_s14, %s881_s13  ;;  %p82_p3 = scmp.ne.s32.totalorder %s881_s13, %s877_s12 }
  0x12   : > { %s1260_s23 = smov (%p998_p1, %s31_s23), 0  ;;  %p608_p5 = scmp.lt.s32.totalorder %s917_s22, 12 }
  0x13   : > { %1224 = sst [smem:[#allocation16_spill]] %s1260_s23  ;;  %p78_p4 = por %p76_p2, %p49_p0 }
  0x14   : > { %s65_s26 = ssub.s32 %s909_s20, %s1260_s23  ;;  %s179_s27 = sand.u32 1, %s917_s22  }
  0x15   : > { %s1209_s28 = sand.u32 1, %s885_s14   ;;  %s531_s30 = sshll.u32 %s909_s20, 4 }
  0x16   : > { %s530_s29 = sshll.u32 %s1209_s28, 6  ;;  %s584_s4 = smul.u32 48, %s913_s21 }
  0x17   : > { %s183_s5 = scalar_lea.vmem [#allocation6], %s530_s29  ;;  %p1024_p6 = pnand %p608_p5, %p78_p4 }
  0x18   : > { %s193_s6 = sshll.u32 %s183_s5, 4  ;;  %s188_s8 = sadd.s32 %s584_s4, %s531_s30  ;;  %s194_s6 = int_to_ptr.vmem [resolvable:$true] %s193_s6 }
  0x19   : > { %s532_s9 = sshll.u32 %s188_s8, 2  ;;  %s1226_s1 = sld [smem:[#allocation22_spill]] }
  0x1a   : > { %p533_p7 = scmp.ge.s32.totalorder %s917_s22, 1  ;;  %p220_p8 = scmp.lt.s32.totalorder %s917_s22, 13 }
  0x1b   : > { %s1033_s28 = scalar_lea.sflag [#allocation7], %s179_s27  ;;  %s919_s30 = smov 64  }
  0x1c   : > { %s920_s4 = smov 4   ;;  %p1038_p9 = pnand %p533_p7, %p220_p8 }
  0x1d   : > { %s525_s27 = sadd.s32 4294967294, %s917_s22   ;;  %s34_s10 = sadd.s32 1, %s913_s21 }
  0x1e   : > { %s1262_s10 = smov (!%p998_p1, %s34_s10), %s913_s21  ;;  %s41_s11 = sadd.s32 1, %s897_s17 }
  0x1f   : > { %s190_s29 = scalar_lea.hbm %s1226_s1, %s532_s9  ;;  %s1043_s9 = sadd.s32 4294967295, %s917_s22  }
  0x20   : > { %s191_s5 = sshll.u32 %s190_s29, 4  ;;  %p48_p10 = scmp.ne.s32.totalorder %s897_s17, %s893_s16  ;;  %s192_s5 = int_to_ptr.hbm [resolvable:$true] %s191_s5 }
  0x21   : > { %600 = dma.hbm_to_vmem [thread:$0]  (!%p1024_p6), %s192_s5, 1024, %s194_s6, %s1033_s28, %s919_s30, %s919_s30, %s920_s4  }
  0x22   : > { %p36_p11 = scmp.ge.s32.totalorder %s1262_s10, 4  ;;  %p54_p12 = scmp.ne.s32.totalorder %s893_s16, %s889_s15 }
  0x23   : > { %p1060_p13 = por %p49_p0, %p48_p10  ;;  %p55_p2 = scmp.eq.s32.totalorder %s1043_s9, 0 }
  0x24   : > { %s1264_s10 = smov (%p36_p11, %s1262_s10), 0  ;;  %p134_p0 = scmp.eq.s32.totalorder %s1043_s9, 11 }
  0x25   : > { %1229 = sst [smem:[#allocation17_spill]] %s1264_s10  ;;  %p1070_p1 = por %p55_p2, %p54_p12 }
  0x26   : > { %p1077_p4 = por %p82_p3, %p55_p2  ;;  %s38_s5 = ssub.s32 %s913_s21, %s1264_s10 }
  0x27   : > { %p39_p7 = scmp.eq.s32.totalorder %s38_s5, 0  ;;  %s66_s30 = sor.u32 %s65_s26, %s38_s5 }
  0x28   : > { %p67_p8 = scmp.eq.s32.totalorder %s66_s30, 0  ;;  %p1090_p11 = por %p134_p0, %p48_p10 }
  0x29   : > { %s1095_s25 = scalar_select %p39_p7, %s897_s17, %s41_s11  }
  0x2a   : > { %s1232_s4 = scalar_select %p1090_p11, 1, 0 }
  0x2b   : > { %1234 = sst [smem:[#allocation19_spill]] %s1095_s25  ;;  %s1235_s12 = sadd.s32 1, %s885_s14 }
  0x2c   : > { %1233 = sst [smem:[#allocation18_spill]] %s1232_s4  ;;  %p140_p3 = scmp.eq.s32.totalorder %s525_s27, 11 }
  0x2d   : > { %s1100_s1 = scalar_select %p67_p8, %s885_s14, %s1235_s12  }
  0x2e   : > { %s160_s10 = sand.u32 1, %s897_s17   ;;  %p1106_p2 = por %p140_p3, %p54_p12 }
  0x2f   : > { %1236 = sst [smem:[#allocation20_spill]] %s1100_s1  ;;  %s528_s23 = sshll.u32 %s160_s10, 2 }
  0x30   : > { %s1237_s26 = scalar_select %p1106_p2, 1, 0 }
  0x31   : > { %s529_s5 = sshll.u32 %s913_s21, 2  ;;  %s164_s30 = scalar_lea.vmem [#allocation3], %s528_s23 }
  0x32   : > { %1238 = sst [smem:[#allocation21_spill]] %s1237_s26  ;;  %s172_s3 = sshll.u32 %s164_s30, 4  ;;  %s173_s3 = int_to_ptr.vmem [resolvable:$true] %s172_s3 }
  0x33   : > { %s168_s11 = scalar_lea.hbm %s1205_s0, %s529_s5  ;;  %p595_p10 = pnand %p608_p5, %p1060_p13 }
  0x34   : > { %s170_s12 = sshll.u32 %s168_s11, 4  ;;  %s585_s27 = smul.u32 3, %s913_s21  ;;  %s171_s12 = int_to_ptr.hbm [resolvable:$true] %s170_s12 }
  0x35   : > { %s161_s25 = scalar_lea.sflag [#allocation4], %s160_s10  ;;  %s1239_s1 = sand.u32 1, %s885_s14  }
  0x36   : > { %597 = dma.hbm_to_vmem [thread:$0]  (!%p595_p10), %s171_s12, 64, %s173_s3, %s161_s25  }
  0x37   : > { %s210_s17 = sadd.s32 %s909_s20, %s585_s27  ;;  %s206_s26 = scalar_lea.vmem [#allocation8], %s1239_s1 }
  0x38   : > { %s215_s23 = sshll.u32 %s206_s26, 4  ;;  %s211_s19 = scalar_lea.hbm %s1207_s2, %s210_s17  ;;  %s216_s23 = int_to_ptr.vmem [resolvable:$true] %s215_s23 }
  0x39   : > { %s213_s4 = sshll.u32 %s211_s19, 4  ;;  %224 = sbr.rel (%p1038_p9) target bundleno = 277 (0x115), region = 32  ;;  %s214_s4 = int_to_ptr.hbm [resolvable:$true] %s213_s4 }
  0x3a   : > { %603 = dma.hbm_to_vmem [thread:$0]  (!%p1024_p6), %s214_s4, 16, %s216_s23, %s1033_s28  }
  0x3b   : > { %s1131_s10 = sand.u32 (!%p1038_p9), 1, %s893_s16  }
  0x3c   : > { %s534_s1 = sshll.u32 (!%p1038_p9), %s1131_s10, 2  ;;  %s227_s3 = scalar_lea.sflag (!%p1038_p9), [#allocation4], %s1131_s10 }
  0x3d   : > { %s230_s25 = scalar_lea.vmem (!%p1038_p9), [#allocation3], %s534_s1 }
  0x3e   : > { %864 = dma.done.wait (%p1070_p1), %s227_s3, 64  }
  0x3f   : > { %866 = vsyncadd (%p1070_p1), %s227_s3, 4294967232  ;;  %s236_s15 = sand.u32 1, %s1043_s9   ;;  %s238_s17 = sand.u32 1, %s881_s13  }
  0x40   : > { %s535_s28 = sshll.u32 %s238_s17, 6  ;;  %s237_s7 = scalar_lea.sflag [#allocation7], %s236_s15 }
  0x41   : > { %s240_s8 = scalar_lea.vmem [#allocation6], %s535_s28 }
  0x42   : > { %868 = dma.done.wait (%p1077_p4), %s237_s7, 1040  }
  0x43   : > { %870 = vsyncadd (%p1077_p4), %s237_s7, 4294966256  ;;  %s536_s6 = sshll.u32 %s1131_s10, 3  ;;  %s249_s26 = scalar_lea.vmem [#allocation8], %s238_s17 }
  0x44   : > { %s1146_s5 = scalar_lea.vmem [#allocation9], %s536_s6  ;;  %p537_p5 = scmp.ne.s32.totalorder %s901_s18, 0 }
  0x46   : > { %285 = sbr.rel (%p537_p5) target bundleno = 79 (0x4f), region = 48 }
  0x4b   : > { %v286_v0 = vld [vmem:[%s230_s25] sm:$0xf] }
  0x4c   : > { %v287_v1 = vunpack.c.l.bf16 %v286_v0 }
  0x4e   : > { %288 = vst [vmem:[#allocation2] sm:$0xff] %v287_v1 }
  0x4f PF: > { %v583_v2 = vld [vmem:[%s240_s8 + $0x38] sm:$0xff]  ;;  %v582_v3 = vld [vmem:[%s240_s8 + $0x30] sm:$0xff]  ;;  %v581_v4 = vld [vmem:[%s240_s8 + $0x28] sm:$0xff]  ;;  %p570_p6 = scmp.ge.s32.totalorder %s901_s18, 2 }
  0x50   : > { %359 = vmatpush.bf16.msra.mxu0 %v583_v2  ;;  %v580_v5 = vld [vmem:[%s240_s8 + $0x20] sm:$0xff]  ;;  %v579_v6 = vld [vmem:[%s240_s8 + $0x18] sm:$0xff]  ;;  %v578_v7 = vld [vmem:[%s240_s8 + $0x10] sm:$0xff] }
  0x51   : > { %v577_v8 = vld [vmem:[%s240_s8 + $0x8] sm:$0xff]  ;;  %v576_v9 = vld [vmem:[%s240_s8] sm:$0xff]  ;;  %v700_v12 = vld [vmem:[%s249_s26] ss:$0 sm:$0xff] }
  0x54   : > { %360 = vmatpush.bf16.msra.mxu0 %v582_v3 }
  0x55   : > { %v289_v10 = vld [vmem:[#allocation2] sm:$0xff] }
  0x56   : > { %v290_v11 = vpack.c.bf16 %v289_v10, %v289_v10 }
  0x58   : > { %361 = vmatpush.bf16.msra.mxu0 %v581_v4 }
  0x5c   : > { %362 = vmatpush.bf16.msra.mxu0 %v580_v5 }
  0x60   : > { %363 = vmatpush.bf16.msra.mxu0 %v579_v6 }
  0x64   : > { %364 = vmatpush.bf16.msra.mxu0 %v578_v7 }
  0x68   : > { %365 = vmatpush.bf16.msra.mxu0 %v577_v8 }
  0x6c   : > { %366 = vmatpush.bf16.msra.mxu0 %v576_v9 }
  0x6f   : > { %367 = vmatmul.bf16.vlgmr.msra.gmra.mxu0 %v290_v11 }
  0xec   : > { %v368_v13 = vpop.f32.mrf.mxu0 }
  0xed   : > { %v369_v14 = vadd.f32 %v700_v12, %v368_v13 }
  0xf0   : > { %375 = sbr.rel (%p570_p6) target bundleno = 248 (0xf8), region = 52 }
  0xf4   : > { %v370_v15 = vpop.f32.mrf.mxu0 }
  0xf5   : > { %v376_v16 = vmax.f32 %v369_v14, 0.0 }
  0xf7   : > { %377 = vst [vmem:[#allocation2] sm:$0xff] %v376_v16 }
  0xf8 PF: > { %p571_p9 = scmp.ne.s32.totalorder %s901_s18, 2 }
  0xfa   : > { %381 = sbr.rel (%p571_p9) target bundleno = 256 (0x100), region = 56 }
  0xff   : > { %382 = vst [vmem:[%s1146_s5] sm:$0xff] %v369_v14 }
 0x100 PF: > { %s1240_s9 = sld [smem:[#allocation15_spill]]  ;;  %s396_s30 = sshll.u32 %s1146_s5, 4  ;;  %s397_s30 = int_to_ptr.vmem [resolvable:$true] %s396_s30 }
 0x101   : > { %s1242_s27 = sld [smem:[#allocation23_spill]]  ;;  %s384_s4 = scalar_lea.sflag [#allocation5], %s1131_s10 }
 0x106   : > { %s573_s29 = sshll.u32 %s1240_s9, 3 }
 0x107   : > { %s394_s23 = scalar_lea.hbm %s1242_s27, %s573_s29  ;;  %s811_s15 = scalar_lea.hbm %s1242_s27, 32 }
 0x108   : > { %s398_s19 = sshll.u32 %s394_s23, 4  ;;  %s399_s19 = int_to_ptr.hbm [resolvable:$true] %s398_s19 }
 0x109   : > { %s805_s1 = sshra.s32 %s399_s19, 4  ;;  %s806_s1 = int_to_ptr.hbm [resolvable:$true] %s805_s1 }
 0x10a   : > { %s807_s18 = scalar_lea.hbm %s806_s1, 8  ;;  %p812_p4 = scmp.lt.s32.totalorder %s806_s1, %s1242_s27 }
 0x10b   : > { %p808_p12 = scmp.ne.s32.totalorder %s806_s1, %s807_s18  ;;  %p813_p0 = scmp.lt.s32.totalorder %s811_s15, %s807_s18 }
 0x10d   : > { %p809_p13 = pnand %p808_p12, %p1090_p11  ;;  %p814_p7 = por %p813_p0, %p812_p4 }
 0x10f   : > { %p810_p1 = pneg %p809_p13 }
 0x111   : > { %p815_p8 = pnand %p814_p7, %p810_p1 }
 0x113   : > { %818 = shalt.err (!%p815_p8)
}
 0x114   : > { %592 = dma.vmem_to_hbm [thread:$0]  (%p1090_p11), %s397_s30, 128, %s399_s19, %s384_s4  }
 0x115 PF: > { %s1243_s10 = sld [smem:[#allocation13_spill]]  ;;  %p609_p3 = scmp.ge.s32.totalorder %s917_s22, 2 }
 0x117   : > { %p605_p10 = pnand %p609_p3, %p1106_p2 }
 0x119   : > { %p606_p5 = pneg %p605_p10 }
 0x11b   : > { %s410_s8 = sand.u32 1, %s1243_s10  }
 0x11c   : > { %s411_s6 = scalar_lea.sflag [#allocation5], %s410_s8 }
 0x11d   : > { %872 = dma.done.wait (%p606_p5), %s411_s6, 128  }
 0x11e   : > { %874 = vsyncadd (%p606_p5), %s411_s6, 4294967168  ;;  %s22_s22 = sadd.s32 1, %s917_s22   ;;  %s1245_s26 = sld [smem:[#allocation20_spill]] }
 0x11f   : > { %p19_p6 = scmp.ge.s32.totalorder %s22_s22, 14   ;;  %s1246_s5 = sld [smem:[#allocation14_spill]] }
 0x120   : > { %s1247_s17 = sld [smem:[#allocation19_spill]]  ;;  %s1250_s12 = smov %s881_s13 }
 0x121   : > { %s1248_s9 = sld [smem:[#allocation16_spill]]  ;;  %s1251_s13 = smov %s885_s14 }
 0x122   : > { %s1249_s24 = sld [smem:[#allocation17_spill]]  ;;  %s1253_s15 = smov %s893_s16 }
 0x123   : > { %s1255_s18 = smov %s909_s20  ;;  %s1256_s19 = smov %s913_s21 }
 0x124   : > { %s1252_s14 = smov %s1245_s26  ;;  %21 = sbr.rel (!%p19_p6) target bundleno = 14 (0xe), region = 113 }
 0x125   : > { %s1254_s16 = smov %s1246_s5 }
 0x127   : > { %s1257_s20 = smov %s1248_s9 }
 0x128   : > { %s1258_s21 = smov %s1249_s24 }
 0x129   :  { %417 = vsyncpa [#allocation4], 1 }
 0x12a   :  { %419 = vsyncpa [#allocation4 + $0x1], 1 }
 0x12b   :  { %420 = vsyncpa [#allocation7], 1 }
 0x12c   :  { %422 = vsyncpa [#allocation7 + $0x1], 1 }
 0x12d   :  { %423 = vsyncpa [#allocation5], 1 }
 0x12e   :  { %425 = vsyncpa [#allocation5 + $0x1], 1 }

</bundles_post_ra>
